<compile_context>
chip_gen: v6e
topology: v6e:2x2x1
jax: 0.10.0
libtpu: 0.0.40
codegen_flags: <defaults>
</compile_context>

<pallas_src>
import functools
import math

import jax
import jax.numpy as jnp
from jax import lax
from jax.experimental import pallas as pl
from jax.experimental.pallas import tpu as pltpu


def _conv_block_kernel(x_ref, w_ref, b_ref, o_ref, *, c_in, c_out, L, K, padding, M):
    # x_ref : (c_in, M)            channel-major input tile, M = b_tile * L (lane-dense)
    # w_ref : (K, c_out, c_in)     per-tap weights, w_ref[k][o, i] = W[o, i, k]
    # b_ref : (c_out, 1)           bias
    # o_ref : (c_in + c_out, M)    rows [0, c_in) = x, rows [c_in, c_in+c_out) = relu(conv)
    x = x_ref[...]

    if padding > 0:
        # One zero-padded copy of the flat lane axis; element boundaries inside the
        # flattened (batch * length) axis are fixed up by the position mask below.
        zpad = jnp.zeros((c_in, padding), dtype=x.dtype)
        x_pad = jnp.concatenate([zpad, x, zpad], axis=1)          # (c_in, M + 2*padding)
        # position of each flat column within its length-L batch element
        pos = lax.broadcasted_iota(jnp.int32, (1, M), 1) % L

    acc = jnp.zeros((c_out, M), dtype=jnp.float32)
    for k in range(K):                      # K is small & static -> unrolled at trace time
        s = k - padding                     # tap offset: col[:, m] = x[:, m + s] within an element
        if s == 0:
            col = x
        else:
            col = x_pad[:, k:k + M]         # flat shift; wrong across element boundaries ...
            valid = (pos < L - s) if s > 0 else (pos >= -s)
            col = jnp.where(valid, col, 0.0)  # ... zeroed by the boundary mask
        # Weight-stationary 2-D matmul on the MXU, N dim = b_tile*L, f32 accumulation.
        acc = acc + jnp.dot(w_ref[k], col, preferred_element_type=jnp.float32)

    y = jnp.maximum(acc + b_ref[...], 0.0)  # bias + ReLU (Dropout == identity in eval)

    # Two stores: no in-register channel concat at a non-8-aligned sublane offset.
    o_ref[:c_in, :] = x
    o_ref[c_in:c_in + c_out, :] = y.astype(o_ref.dtype)


def _pick_batch_tile(N, c_in, c_out, L, K, budget_bytes):
    """Largest batch tile whose per-step VMEM footprint fits the budget, kept
    lane-aligned (b_tile*L % 128 == 0 when tiling) and leaving >= 4 grid steps
    (>= 2 per v7x TensorCore) whenever the batch is large enough."""
    def pad8(c):
        return -(-c // 8) * 8

    # f32 bytes per batch element per grid step (double-buffered blocks + temps)
    per_elem = 4 * L * (2 * pad8(c_in)               # input block  x2 (pipeline)
                        + 2 * pad8(c_in + c_out)     # output block x2 (pipeline)
                        + (K + 1) * pad8(c_in)       # x_pad + shifted/masked views
                        + 2 * pad8(c_out))           # f32 acc + relu result
    align = 128 // math.gcd(L, 128)                  # makes b_tile*L a multiple of 128
    bt_budget = max(align, (budget_bytes // per_elem) // align * align)
    if N >= 4 * align:
        bt_steps = max(align, (N // 4) // align * align)
        bt = min(bt_budget, bt_steps)
    else:
        bt = min(bt_budget, -(-N // align) * align)
    # A single full-batch block needs no lane alignment (block == full array).
    return N if bt >= N else bt


def conv_block(x, w, b, *, kernel_size=3, stride=1, padding=1,
               b_tile=None, vmem_limit_bytes=32 * 1024 * 1024):
    """x: (N, C_in, L); w: (C_out, C_in, K); b: (C_out,). Returns (N, C_in+C_out, L)."""
    N, c_in, L = x.shape
    c_out, c_in_w, K = w.shape
    assert c_in_w == c_in
    assert K == kernel_size
    # The module concatenates x with conv(x) along channels, so the conv must be
    # a stride-1 "same" convolution.
    assert stride == 1, "convBlock requires stride=1 (same-length conv)"
    assert 2 * padding == K - 1, "output length == L requires 2*padding == kernel_size-1"
    assert padding < L

    if b_tile is None:
        # Conservative budget under the 32 MiB scoped VMEM of v7x; callers on
        # v5e/v6e (128 MiB VMEM) may raise vmem_limit_bytes to 64-96 MiB.
        b_tile = _pick_batch_tile(N, c_in, c_out, L, K,
                                  budget_bytes=int(vmem_limit_bytes * 0.6))
    n_pad = -(-N // b_tile) * b_tile

    # Layout plumbing in the wrapper: channel-major, flattened (lane-dense) views.
    xp = x if n_pad == N else jnp.concatenate(
        [x, jnp.zeros((n_pad - N, c_in, L), x.dtype)], axis=0)
    x_cm = jnp.transpose(xp, (1, 0, 2)).reshape(c_in, n_pad * L)   # (c_in, N_pad*L)
    w_k = jnp.transpose(w, (2, 0, 1))                              # (K, c_out, c_in)
    b2 = b.reshape(c_out, 1)

    M = b_tile * L
    kernel = functools.partial(_conv_block_kernel, c_in=c_in, c_out=c_out,
                               L=L, K=K, padding=padding, M=M)

    out_cm = pl.pallas_call(
        kernel,
        out_shape=jax.ShapeDtypeStruct((c_in + c_out, n_pad * L), x.dtype),
        grid_spec=pltpu.PrefetchScalarGridSpec(
            num_scalar_prefetch=0,
            grid=(n_pad // b_tile,),
            in_specs=[
                pl.BlockSpec((c_in, M), lambda n: (0, n)),
                pl.BlockSpec((K, c_out, c_in), lambda n: (0, 0, 0)),
                pl.BlockSpec((c_out, 1), lambda n: (0, 0)),
            ],
            out_specs=pl.BlockSpec((c_in + c_out, M), lambda n: (0, n)),
        ),
        compiler_params=pltpu.CompilerParams(
            dimension_semantics=("parallel",),
            vmem_limit_bytes=vmem_limit_bytes,
        ),
    )(x_cm, w_k, b2)

    out = out_cm.reshape(c_in + c_out, n_pad, L)[:, :N, :]
    return jnp.transpose(out, (1, 0, 2))                           # (N, c_in+c_out, L)


def _reference(x, w, b, padding=1):
    # lax conv: NCL input, OIK kernel (cross-correlation, same as torch Conv1d)
    y = lax.conv_general_dilated(
        x, w, window_strides=(1,), padding=[(padding, padding)],
        dimension_numbers=("NCH", "OIH", "NCH"),
    ) + b.reshape(1, -1, 1)
    y = jnp.maximum(y, 0.0)
    return jnp.concatenate([x, y], axis=1)


def _run_case(key, N, c_in, c_out, L, K, padding):
    kx, kw, kb = jax.random.split(key, 3)
    x = jax.random.normal(kx, (N, c_in, L), dtype=jnp.float32)
    w = jax.random.normal(kw, (c_out, c_in, K), dtype=jnp.float32) * 0.1
    b = jax.random.normal(kb, (c_out,), dtype=jnp.float32) * 0.1

    out = jax.block_until_ready(conv_block(x, w, b, kernel_size=K, padding=padding))
    ref = _reference(x, w, b, padding=padding)
    assert out.shape == (N, c_in + c_out, L), out.shape
    err = float(jnp.max(jnp.abs(out - ref)))
    assert jnp.allclose(out, ref, atol=1e-5, rtol=1e-5), err


if __name__ == "__main__":
    key = jax.random.PRNGKey(0)
    k1, k2 = jax.random.split(key)

    # Small shape consistent with the module's forward (single grid step).
    _run_case(k1, N=2, c_in=4, c_out=8, L=16, K=3, padding=1)

    # Slightly larger batch: exercises batch tiling (multi-step grid, lane-aligned
    # blocks) and the batch-padding path (36 -> 40).
    _run_case(k2, N=36, c_in=4, c_out=8, L=16, K=3, padding=1)

    print("KERNEL_OK")
</pallas_src>

<mosaic_0001>
module attributes {stable_mosaic.version = 11 : i64} {
  func.func @_conv_block_kernel(%arg0: i32, %arg1: memref<4x32xf32, #tpu.memory_space<vmem>>, %arg2: memref<3x8x4xf32, #tpu.memory_space<vmem>>, %arg3: memref<8x1xf32, #tpu.memory_space<vmem>>, %arg4: memref<12x32xf32, #tpu.memory_space<vmem>>) attributes {dimension_semantics = [#tpu.dimension_semantics<parallel>], iteration_bounds = array<i64: 1>, scalar_prefetch = 0 : i64, scratch_operands = 0 : i64, tpu.core_type = #tpu.core_type<tc>, window_params = [{transform_indices = @transform_0, window_bounds = array<i64: 4, 32>}, {pipeline_mode = #tpu.pipeline_mode<synchronous>, transform_indices = @transform_1, window_bounds = array<i64: 3, 8, 4>}, {pipeline_mode = #tpu.pipeline_mode<synchronous>, transform_indices = @transform_2, window_bounds = array<i64: 8, 1>}, {transform_indices = @transform_3, window_bounds = array<i64: 12, 32>}]} {
    %c0 = arith.constant 0 : index
    %c0_0 = arith.constant 0 : index
    %0 = vector.load %arg1[%c0, %c0_0] : memref<4x32xf32, #tpu.memory_space<vmem>>, vector<4x32xf32>
    %cst = arith.constant 0.000000e+00 : f32
    %1 = vector.broadcast %cst : f32 to vector<4x1xf32>
    %2 = tpu.concatenate %1, %0, %1 in 1 : vector<4x1xf32>, vector<4x32xf32>, vector<4x1xf32> -> vector<4x34xf32>
    %3 = tpu.iota {dimensions = array<i32: 1>} : vector<1x32xi32>
    %c16_i32 = arith.constant 16 : i32
    %c0_i32 = arith.constant 0 : i32
    %4 = arith.cmpi eq, %c16_i32, %c0_i32 : i32
    %c1_i32 = arith.constant 1 : i32
    %5 = arith.select %4, %c1_i32, %c16_i32 : i32
    %6 = vector.broadcast %5 : i32 to vector<1x32xi32>
    %7 = arith.remsi %3, %6 : vector<1x32xi32>
    %c0_i32_1 = arith.constant 0 : i32
    %8 = vector.broadcast %c0_i32_1 : i32 to vector<1x32xi32>
    %9 = arith.cmpi ne, %7, %8 : vector<1x32xi32>
    %c0_i32_2 = arith.constant 0 : i32
    %10 = vector.broadcast %c0_i32_2 : i32 to vector<1x32xi32>
    %11 = arith.cmpi slt, %7, %10 : vector<1x32xi32>
    %c0_i32_3 = arith.constant 0 : i32
    %12 = arith.cmpi slt, %5, %c0_i32_3 : i32
    %13 = vector.broadcast %12 : i1 to vector<1x32xi1>
    %14 = vector.broadcast %13 : vector<1x32xi1> to vector<1x32xi1>
    %15 = arith.xori %11, %14 : vector<1x32xi1>
    %16 = arith.andi %15, %9 : vector<1x32xi1>
    %17 = vector.broadcast %5 : i32 to vector<1x32xi32>
    %18 = arith.addi %7, %17 : vector<1x32xi32>
    %19 = arith.select %16, %18, %7 : vector<1x32xi1>, vector<1x32xi32>
    %cst_4 = arith.constant 0.000000e+00 : f32
    %20 = vector.broadcast %cst_4 : f32 to vector<8x32xf32>
    %21 = vector.extract_strided_slice %2 {offsets = [0, 0], sizes = [4, 32], strides = [1, 1]} : vector<4x34xf32> to vector<4x32xf32>
    %c1_i32_5 = arith.constant 1 : i32
    %22 = vector.broadcast %c1_i32_5 : i32 to vector<1x32xi32>
    %23 = arith.cmpi sge, %19, %22 : vector<1x32xi32>
    %cst_6 = arith.constant 0.000000e+00 : f32
    %24 = vector.shape_cast %23 : vector<1x32xi1> to vector<1x32xi1>
    %25 = vector.broadcast %24 : vector<1x32xi1> to vector<4x32xi1>
    %26 = vector.broadcast %cst_6 : f32 to vector<4x32xf32>
    %27 = arith.select %25, %21, %26 : vector<4x32xi1>, vector<4x32xf32>
    %c0_7 = arith.constant 0 : index
    %c0_8 = arith.constant 0 : index
    %c0_9 = arith.constant 0 : index
    %28 = vector.load %arg2[%c0_7, %c0_8, %c0_9] : memref<3x8x4xf32, #tpu.memory_space<vmem>>, vector<1x8x4xf32>
    %29 = vector.shape_cast %28 : vector<1x8x4xf32> to vector<8x4xf32>
    %cst_10 = arith.constant dense<0.000000e+00> : vector<8x32xf32>
    %30 = tpu.matmul %29, %27, %cst_10 {dimension_numbers = #tpu.dot_dimension_numbers<[1], [0], [0], [1], [0, 0, 1, 1], [], []>} : vector<8x4xf32>, vector<4x32xf32>, vector<8x32xf32> -> vector<8x32xf32>
    %31 = arith.addf %20, %30 : vector<8x32xf32>
    %c1 = arith.constant 1 : index
    %c0_11 = arith.constant 0 : index
    %c0_12 = arith.constant 0 : index
    %32 = vector.load %arg2[%c1, %c0_11, %c0_12] : memref<3x8x4xf32, #tpu.memory_space<vmem>>, vector<1x8x4xf32>
    %33 = vector.shape_cast %32 : vector<1x8x4xf32> to vector<8x4xf32>
    %cst_13 = arith.constant dense<0.000000e+00> : vector<8x32xf32>
    %34 = tpu.matmul %33, %0, %cst_13 {dimension_numbers = #tpu.dot_dimension_numbers<[1], [0], [0], [1], [0, 0, 1, 1], [], []>} : vector<8x4xf32>, vector<4x32xf32>, vector<8x32xf32> -> vector<8x32xf32>
    %35 = arith.addf %31, %34 : vector<8x32xf32>
    %36 = vector.extract_strided_slice %2 {offsets = [0, 2], sizes = [4, 32], strides = [1, 1]} : vector<4x34xf32> to vector<4x32xf32>
    %c15_i32 = arith.constant 15 : i32
    %37 = vector.broadcast %c15_i32 : i32 to vector<1x32xi32>
    %38 = arith.cmpi slt, %19, %37 : vector<1x32xi32>
    %cst_14 = arith.constant 0.000000e+00 : f32
    %39 = vector.shape_cast %38 : vector<1x32xi1> to vector<1x32xi1>
    %40 = vector.broadcast %39 : vector<1x32xi1> to vector<4x32xi1>
    %41 = vector.broadcast %cst_14 : f32 to vector<4x32xf32>
    %42 = arith.select %40, %36, %41 : vector<4x32xi1>, vector<4x32xf32>
    %c2 = arith.constant 2 : index
    %c0_15 = arith.constant 0 : index
    %c0_16 = arith.constant 0 : index
    %43 = vector.load %arg2[%c2, %c0_15, %c0_16] : memref<3x8x4xf32, #tpu.memory_space<vmem>>, vector<1x8x4xf32>
    %44 = vector.shape_cast %43 : vector<1x8x4xf32> to vector<8x4xf32>
    %cst_17 = arith.constant dense<0.000000e+00> : vector<8x32xf32>
    %45 = tpu.matmul %44, %42, %cst_17 {dimension_numbers = #tpu.dot_dimension_numbers<[1], [0], [0], [1], [0, 0, 1, 1], [], []>} : vector<8x4xf32>, vector<4x32xf32>, vector<8x32xf32> -> vector<8x32xf32>
    %46 = arith.addf %35, %45 : vector<8x32xf32>
    %c0_18 = arith.constant 0 : index
    %c0_19 = arith.constant 0 : index
    %47 = vector.load %arg3[%c0_18, %c0_19] : memref<8x1xf32, #tpu.memory_space<vmem>>, vector<8x1xf32>
    %48 = vector.broadcast %47 : vector<8x1xf32> to vector<8x32xf32>
    %49 = arith.addf %46, %48 : vector<8x32xf32>
    %cst_20 = arith.constant 0.000000e+00 : f32
    %50 = vector.broadcast %cst_20 : f32 to vector<8x32xf32>
    %51 = arith.maximumf %49, %50 : vector<8x32xf32>
    %c0_21 = arith.constant 0 : index
    %c0_22 = arith.constant 0 : index
    %52 = vector.load %arg4[%c0_21, %c0_22] : memref<12x32xf32, #tpu.memory_space<vmem>>, vector<4x32xf32>
    tpu.vector_store %arg4[%c0_21, %c0_22], %0 {strides = array<i32>} : memref<12x32xf32, #tpu.memory_space<vmem>>, vector<4x32xf32>,
    %c4 = arith.constant 4 : index
    %c0_23 = arith.constant 0 : index
    %53 = vector.load %arg4[%c4, %c0_23] : memref<12x32xf32, #tpu.memory_space<vmem>>, vector<8x32xf32>
    tpu.vector_store %arg4[%c4, %c0_23], %51 {strides = array<i32>} : memref<12x32xf32, #tpu.memory_space<vmem>>, vector<8x32xf32>,
    return
  }
  func.func @transform_0(%arg0: i32) -> (i32, i32) {
    %c0_i32 = arith.constant 0 : i32
    %c0_i32_0 = arith.constant 0 : i32
    return %c0_i32, %arg0 : i32, i32
  }
  func.func @transform_1(%arg0: i32) -> (i32, i32, i32) {
    %c0_i32 = arith.constant 0 : i32
    %c0_i32_0 = arith.constant 0 : i32
    %c0_i32_1 = arith.constant 0 : i32
    %c0_i32_2 = arith.constant 0 : i32
    return %c0_i32, %c0_i32_0, %c0_i32_1 : i32, i32, i32
  }
  func.func @transform_2(%arg0: i32) -> (i32, i32) {
    %c0_i32 = arith.constant 0 : i32
    %c0_i32_0 = arith.constant 0 : i32
    %c0_i32_1 = arith.constant 0 : i32
    return %c0_i32, %c0_i32_0 : i32, i32
  }
  func.func @transform_3(%arg0: i32) -> (i32, i32) {
    %c0_i32 = arith.constant 0 : i32
    %c0_i32_0 = arith.constant 0 : i32
    return %c0_i32, %arg0 : i32, i32
  }
}

</mosaic_0001>

<bundles_post_ra>
// kernel: tpu_custom_call.1
= control target key start
LH: loop header
LB: loop body
LE: loop exit
PB: predicated region body
PF: predicated region fallthrough
CT: control target
= control target key end

     0   :  { %vm293_vm0 = vcmask 257024   ;;  %s374_s14 = smov 1   ;;  %s426_s0 = inlined_call_operand.vmem [shape: f32[4,32], index: 0, kind: input, shape index: {}]   ;;  %s427_s1 = inlined_call_operand.vmem [shape: f32[3,8,4], index: 1, kind: input, shape index: {}]   ;;  %s428_s2 = inlined_call_operand.vmem [shape: f32[8,1], index: 2, kind: input, shape index: {}]   ;;  %s429_s3 = inlined_call_operand.hbm [shape: f32[12,32], index: 3, kind: output, shape index: {}]  }
   0x1   :  { %v15_v0 = vld [vmem:[%s426_s0] sm:$0xf] }
   0x2   :  { %17 = vrot.lane.b32.xlu0 %v15_v0, %s374_s14  ;;  %294 = vst.msk [vmem:[#allocation2] sm:$0xf] %vm293_vm0, %v15_v0 }
   0x3   :  { %8 = vsyncpa [#allocation3], 0  ;;  %v375_v1 = vmov 0.0   ;;  %vm49_vm1 = vcmask 1043456   ;;  %vm376_vm2 = vmmov 0   ;;  %v313_v2 = vld [vmem:[%s427_s1 + $0x8] sm:$0xff]  ;;  %v24_v3 = vlaneseq }
   0x4   :  { %332 = vmatprep.subr.mxu1 %v375_v1  ;;  %327 = vmatprep.subr.mxu0 %v375_v1  ;;  %vm45_vm3 = vcmask 31744   ;;  %v285_v5 = vld [vmem:[%s428_s2] sm:$0xff]  ;;  %v377_v6 = vmov 0   ;;  %vm20_vm4 = vcmask 7168   ;;  %vm22_vm5 = vcmask 269312   ;;  %s378_s20 = smov 126  }
   0x5   :  { %328 = vmatpush3.msk.msra.mxu0 %vm49_vm1, %v15_v0  ;;  %329 = vmatprep.mubr.msk.f32.mxu0 %vm376_vm2, %v375_v1  ;;  %v25_v4 = vand.u32 127, %v24_v3  ;;  %v42_v11 = vld [vmem:[%s427_s1] sm:$0xff]  ;;  %v318_v14 = vld [vmem:[%s427_s1 + $0x10] sm:$0xff]  ;;  %s379_s22 = smov [#allocation2]   ;;  %vm295_vm8 = vcmask 261120  }
   0x6   :  { %334 = vmatprep.mubr.msk.f32.mxu1 %vm376_vm2, %v375_v1  ;;  %337 = vmatprep.subr.mxu0 %v375_v1  ;;  %s302_s23 = sshll.u32 %s379_s22, 4  ;;  %s303_s23 = int_to_ptr.vmem [resolvable:$true] %s302_s23 }
   0x7   :  { %330 = vmatmul.mubr.msk.f32.vlgmr.msra.gmra.mxu0 %vm45_vm3, %v313_v2  ;;  %350 = vset.pattern.permute.xlu1 %v377_v6  ;;  %v30_v7 = vand.u32 15, %v25_v4  ;;  %s352_s1 = scalar_lea.vmem %s303_s23, 256  ;;  %p357_p1 = scmp.lt.s32.totalorder %s303_s23, %s303_s23 }
   0x8   :  { %339 = vmatprep.mubr.msk.f32.mxu0 %vm376_vm2, %v375_v1  ;;  %351 = vset.pattern.permute.xlu0 %v377_v6  ;;  %p353_p0 = scmp.ne.s32.totalorder %s303_s23, %s352_s1  ;;  %p358_p2 = scmp.lt.s32.totalorder %s352_s1, %s352_s1 }
   0x9   :  { %288 = vperm.xlu1 %350, %v285_v5   ;;  %vm38_vm6 = vcmp.ge.s32.totalorder %v30_v7, 1  ;;  %vm198_vm7 = vcmp.lt.s32.totalorder %v30_v7, 15 }
   0xa   :  { %p359_p3 = por %p358_p2, %p357_p1 }
   0xc   :  { %p360_p4 = pnand %p359_p3, %p353_p0 }
  0x74   :  { %v18_v8 = vpop.permute.xlu0 %17 }
  0x75   :  { %v21_v9 = vsel %vm20_vm4, 0.0, %v18_v8 }
  0x76   :  { %v23_v10 = vsel %vm22_vm5, %v21_v9, 0.0 }
  0x77   :  { %202 = vrot.lane.b32.xlu0 %v23_v10, %s378_s20  ;;  %v41_v12 = vsel %vm38_vm6, %v23_v10, 0.0 }
  0x78   :  { %333 = vmatpush3.msk.msra.mxu1 %vm49_vm1, %v41_v12 }
  0x79   :  { %335 = vmatmul.mubr.msk.f32.vlgmr.msra.gmra.mxu1 %vm45_vm3, %v42_v11 }
  0x84   :  { %v289_v22 = vpop.permute.xlu1 %288 }
  0xc7   :  { %v118_v16 = vpop.f32.mrf.mxu0 }
  0xc9   :  { %v331_v17 = vpop.f32.mrf.mxu0 }
  0xe9   :  { %v203_v13 = vpop.permute.xlu0 %202 }
  0xea   :  { %v205_v15 = vsel %vm198_vm7, %v203_v13, 0.0 }
  0xeb   :  { %338 = vmatpush3.msk.msra.mxu0 %vm49_vm1, %v205_v15 }
  0xec   :  { %340 = vmatmul.mubr.msk.f32.vlgmr.msra.gmra.mxu0 %vm45_vm3, %v318_v14 }
 0x139   :  { %v194_v18 = vpop.f32.mrf.mxu1 }
 0x13a   :  { %v195_v19 = vadd.f32 %v194_v18, %v118_v16 }
 0x13b   :  { %v336_v20 = vpop.f32.mrf.mxu1 }
 0x1ac   :  { %v280_v21 = vpop.f32.mrf.mxu0 }
 0x1ad   :  { %v284_v23 = vadd.f32 %v280_v21, %v195_v19 }
 0x1ae   :  { %v341_v24 = vpop.f32.mrf.mxu0 }
 0x1af   :  { %v291_v25 = vadd.f32 %v289_v22, %v284_v23 }
 0x1b1   :  { %v292_v26 = vmax.f32 %v291_v25, 0.0 }
 0x1b3   :  { %296 = vst.msk [vmem:[#allocation2 + $0x4] sm:$0xff] %vm295_vm8, %v292_v26 }
 0x1b4   :  { %363 = shalt.err (!%p360_p4)
}
 0x1b5   :  { %s380_s24 = smov 128   ;;  %s381_s25 = smov 8  }
 0x1b6   :  { %308 = dma.vmem_to_hbm [thread:$0]  %s303_s23, 256, %s429_s3, [#allocation3], %s380_s24, %s380_s24, %s381_s25  }
 0x1b7   :  { %372 = dma.done.wait [#allocation3], 256  }
 0x1b8   :  { %373 = vsyncadd [#allocation3], 4294967040 }
 0x1b9   :  { %312 = vsyncpa [#allocation3], 1 }

</bundles_post_ra>
